<compile_context>
chip_gen: v7x
topology: tpu7x:2x2x1
jax: 0.10.0
libtpu: 0.0.40
codegen_flags: <defaults>
</compile_context>

<pallas_src>
import jax
import jax.numpy as jnp
from jax.experimental import pallas as pl
from jax.experimental.pallas import tpu as pltpu

IN_FEATURES = 64     # len(arr)
HIDDEN = 32
OUT_FEATURES = 16    # len(tags)
MAX_TILE_B = 1024    # rows per grid step upper bound (VMEM use stays < 1 MiB)


def mlp_kernel(x_ref, w1_ref, b1_ref, w2_ref, b2_ref, w3_ref, b3_ref, o_ref):
    """relu(x@W1+b1) -> relu(.@W2+b2) -> .@W3+b3 on one (TILE_B, 64) batch tile."""
    x = x_ref[...].astype(jnp.bfloat16)                               # cast in-kernel

    h1 = jnp.dot(x, w1_ref[...], preferred_element_type=jnp.float32) + b1_ref[...]
    h1 = jnp.maximum(h1, 0.0)                                         # f32 elementwise

    h2 = jnp.dot(h1.astype(jnp.bfloat16), w2_ref[...],
                 preferred_element_type=jnp.float32) + b2_ref[...]
    h2 = jnp.maximum(h2, 0.0)                                         # f32 elementwise

    out = jnp.dot(h2.astype(jnp.bfloat16), w3_ref[...],
                  preferred_element_type=jnp.float32) + b3_ref[...]   # (TILE_B, 16) f32
    o_ref[...] = out.astype(o_ref.dtype)


def prepare_params(params):
    """One-time re-layout of PyTorch-style params:
    (out,in) -> (in,out) bf16 weights, f32 (1,out) bias rows.  No padding."""
    w1 = params["fc1_w"].T.astype(jnp.bfloat16)          # (64, 32)
    b1 = params["fc1_b"].astype(jnp.float32)[None, :]    # (1, 32)
    w2 = params["fc2_w"].T.astype(jnp.bfloat16)          # (32, 32)
    b2 = params["fc2_b"].astype(jnp.float32)[None, :]    # (1, 32)
    w3 = params["fc3_w"].T.astype(jnp.bfloat16)          # (32, 16)
    b3 = params["fc3_b"].astype(jnp.float32)[None, :]    # (1, 16)
    return dict(w1=w1, b1=b1, w2=w2, b2=b2, w3=w3, b3=b3)


def _choose_tile_b(b):
    """Large tiles to amortize per-step overhead, but keep >= 2 grid steps when
    the batch allows so v7x's two TensorCores both get work (harmless on v5e/v6e)."""
    b8 = ((b + 7) // 8) * 8                      # sublane-aligned batch
    half = max(8, ((b8 // 2 + 7) // 8) * 8)      # ~half the batch, 8-row aligned
    return int(min(MAX_TILE_B, half))


@jax.jit
def net_forward(x, prepped):
    b = x.shape[0]
    tile_b = _choose_tile_b(b)
    b_pad = pl.cdiv(b, tile_b) * tile_b
    # Pad only when needed; no wrapper-side dtype cast (cast happens in-kernel).
    xp = x if b_pad == b else jnp.pad(x, ((0, b_pad - b), (0, 0)))

    resident = lambda i: (0, 0)   # weights/biases stay in VMEM across all grid steps

    flops = 2 * b_pad * (IN_FEATURES * HIDDEN + HIDDEN * HIDDEN + HIDDEN * OUT_FEATURES)
    bytes_accessed = (
        b_pad * IN_FEATURES * 4                      # x (f32 in)
        + b_pad * OUT_FEATURES * 4                   # out (f32)
        + sum(int(v.size) * v.dtype.itemsize for v in prepped.values())
    )

    out = pl.pallas_call(
        mlp_kernel,
        out_shape=jax.ShapeDtypeStruct((b_pad, OUT_FEATURES), jnp.float32),
        grid=(b_pad // tile_b,),
        in_specs=[
            pl.BlockSpec((tile_b, IN_FEATURES), lambda i: (i, 0)),     # x tile
            pl.BlockSpec((IN_FEATURES, HIDDEN), resident),             # w1
            pl.BlockSpec((1, HIDDEN), resident),                       # b1
            pl.BlockSpec((HIDDEN, HIDDEN), resident),                  # w2
            pl.BlockSpec((1, HIDDEN), resident),                       # b2
            pl.BlockSpec((HIDDEN, OUT_FEATURES), resident),            # w3
            pl.BlockSpec((1, OUT_FEATURES), resident),                 # b3
        ],
        out_specs=pl.BlockSpec((tile_b, OUT_FEATURES), lambda i: (i, 0)),
        compiler_params=pltpu.CompilerParams(
            dimension_semantics=("parallel",),   # lets v7x split batch tiles over 2 TCs
        ),
        cost_estimate=pl.CostEstimate(
            flops=flops, transcendentals=0, bytes_accessed=bytes_accessed),
    )(xp, prepped["w1"], prepped["b1"], prepped["w2"], prepped["b2"],
      prepped["w3"], prepped["b3"])

    return out if b_pad == b else out[:b]


def init_params(key):
    """Deterministic init mimicking torch.nn.Linear's U(-1/sqrt(fan_in), +)."""
    ks = jax.random.split(key, 6)

    def lin(kw, kb, fan_in, fan_out):
        bound = 1.0 / jnp.sqrt(fan_in)
        w = jax.random.uniform(kw, (fan_out, fan_in), jnp.float32, -bound, bound)
        b = jax.random.uniform(kb, (fan_out,), jnp.float32, -bound, bound)
        return w, b

    fc1_w, fc1_b = lin(ks[0], ks[1], IN_FEATURES, HIDDEN)
    fc2_w, fc2_b = lin(ks[2], ks[3], HIDDEN, HIDDEN)
    fc3_w, fc3_b = lin(ks[4], ks[5], HIDDEN, OUT_FEATURES)
    return dict(fc1_w=fc1_w, fc1_b=fc1_b,
                fc2_w=fc2_w, fc2_b=fc2_b,
                fc3_w=fc3_w, fc3_b=fc3_b)


def reference_forward(x, p):
    h = jnp.maximum(x @ p["fc1_w"].T + p["fc1_b"], 0.0)
    h = jnp.maximum(h @ p["fc2_w"].T + p["fc2_b"], 0.0)
    return h @ p["fc3_w"].T + p["fc3_b"]


if __name__ == "__main__":
    key = jax.random.PRNGKey(0)
    k_x, k_p = jax.random.split(key)

    BATCH = 200   # not tile-aligned on purpose: exercises pad + un-pad slice path
    x = jax.random.normal(k_x, (BATCH, IN_FEATURES), jnp.float32)
    params = init_params(k_p)
    prepped = prepare_params(params)

    out = net_forward(x, prepped)
    out = jax.block_until_ready(out)

    ref = reference_forward(x, params)   # f32 reference
    assert out.shape == (BATCH, OUT_FEATURES), out.shape
    # bf16 matmul operands with f32 accumulation -> relaxed tolerance vs f32 ref.
    assert jnp.allclose(out, ref, atol=5e-2, rtol=5e-2), float(jnp.max(jnp.abs(out - ref)))

    print("KERNEL_OK")
</pallas_src>

<mosaic_0001>
module attributes {stable_mosaic.version = 11 : i64} {
  func.func @mlp_kernel(%arg0: i32, %arg1: memref<104x64xf32, #tpu.memory_space<vmem>>, %arg2: memref<64x32xbf16, #tpu.memory_space<vmem>>, %arg3: memref<1x32xf32, #tpu.memory_space<vmem>>, %arg4: memref<32x32xbf16, #tpu.memory_space<vmem>>, %arg5: memref<1x32xf32, #tpu.memory_space<vmem>>, %arg6: memref<32x16xbf16, #tpu.memory_space<vmem>>, %arg7: memref<1x16xf32, #tpu.memory_space<vmem>>, %arg8: memref<104x16xf32, #tpu.memory_space<vmem>>) attributes {dimension_semantics = [#tpu.dimension_semantics<parallel>], iteration_bounds = array<i64: 2>, scalar_prefetch = 0 : i64, scratch_operands = 0 : i64, tpu.core_type = #tpu.core_type<tc>, window_params = [{transform_indices = @transform_0, window_bounds = array<i64: 104, 64>}, {pipeline_mode = #tpu.pipeline_mode<synchronous>, transform_indices = @transform_1, window_bounds = array<i64: 64, 32>}, {pipeline_mode = #tpu.pipeline_mode<synchronous>, transform_indices = @transform_2, window_bounds = array<i64: 1, 32>}, {pipeline_mode = #tpu.pipeline_mode<synchronous>, transform_indices = @transform_3, window_bounds = array<i64: 32, 32>}, {pipeline_mode = #tpu.pipeline_mode<synchronous>, transform_indices = @transform_4, window_bounds = array<i64: 1, 32>}, {pipeline_mode = #tpu.pipeline_mode<synchronous>, transform_indices = @transform_5, window_bounds = array<i64: 32, 16>}, {pipeline_mode = #tpu.pipeline_mode<synchronous>, transform_indices = @transform_6, window_bounds = array<i64: 1, 16>}, {transform_indices = @transform_7, window_bounds = array<i64: 104, 16>}]} {
    %c0 = arith.constant 0 : index
    %c0_0 = arith.constant 0 : index
    %0 = vector.load %arg1[%c0, %c0_0] : memref<104x64xf32, #tpu.memory_space<vmem>>, vector<104x64xf32>
    %1 = arith.truncf %0 : vector<104x64xf32> to vector<104x64xbf16>
    %c0_1 = arith.constant 0 : index
    %c0_2 = arith.constant 0 : index
    %2 = vector.load %arg2[%c0_1, %c0_2] : memref<64x32xbf16, #tpu.memory_space<vmem>>, vector<64x32xbf16>
    %cst = arith.constant dense<0.000000e+00> : vector<104x32xf32>
    %3 = tpu.matmul %1, %2, %cst {dimension_numbers = #tpu.dot_dimension_numbers<[1], [0], [0], [1], [0, 0, 1, 1], [], []>} : vector<104x64xbf16>, vector<64x32xbf16>, vector<104x32xf32> -> vector<104x32xf32>
    %c0_3 = arith.constant 0 : index
    %c0_4 = arith.constant 0 : index
    %4 = vector.load %arg3[%c0_3, %c0_4] : memref<1x32xf32, #tpu.memory_space<vmem>>, vector<1x32xf32>
    %5 = vector.broadcast %4 : vector<1x32xf32> to vector<104x32xf32>
    %6 = arith.addf %3, %5 : vector<104x32xf32>
    %cst_5 = arith.constant 0.000000e+00 : f32
    %7 = vector.broadcast %cst_5 : f32 to vector<104x32xf32>
    %8 = arith.maximumf %6, %7 : vector<104x32xf32>
    %9 = arith.truncf %8 : vector<104x32xf32> to vector<104x32xbf16>
    %c0_6 = arith.constant 0 : index
    %c0_7 = arith.constant 0 : index
    %10 = vector.load %arg4[%c0_6, %c0_7] : memref<32x32xbf16, #tpu.memory_space<vmem>>, vector<32x32xbf16>
    %cst_8 = arith.constant dense<0.000000e+00> : vector<104x32xf32>
    %11 = tpu.matmul %9, %10, %cst_8 {dimension_numbers = #tpu.dot_dimension_numbers<[1], [0], [0], [1], [0, 0, 1, 1], [], []>} : vector<104x32xbf16>, vector<32x32xbf16>, vector<104x32xf32> -> vector<104x32xf32>
    %c0_9 = arith.constant 0 : index
    %c0_10 = arith.constant 0 : index
    %12 = vector.load %arg5[%c0_9, %c0_10] : memref<1x32xf32, #tpu.memory_space<vmem>>, vector<1x32xf32>
    %13 = vector.broadcast %12 : vector<1x32xf32> to vector<104x32xf32>
    %14 = arith.addf %11, %13 : vector<104x32xf32>
    %cst_11 = arith.constant 0.000000e+00 : f32
    %15 = vector.broadcast %cst_11 : f32 to vector<104x32xf32>
    %16 = arith.maximumf %14, %15 : vector<104x32xf32>
    %17 = arith.truncf %16 : vector<104x32xf32> to vector<104x32xbf16>
    %c0_12 = arith.constant 0 : index
    %c0_13 = arith.constant 0 : index
    %18 = vector.load %arg6[%c0_12, %c0_13] : memref<32x16xbf16, #tpu.memory_space<vmem>>, vector<32x16xbf16>
    %cst_14 = arith.constant dense<0.000000e+00> : vector<104x16xf32>
    %19 = tpu.matmul %17, %18, %cst_14 {dimension_numbers = #tpu.dot_dimension_numbers<[1], [0], [0], [1], [0, 0, 1, 1], [], []>} : vector<104x32xbf16>, vector<32x16xbf16>, vector<104x16xf32> -> vector<104x16xf32>
    %c0_15 = arith.constant 0 : index
    %c0_16 = arith.constant 0 : index
    %20 = vector.load %arg7[%c0_15, %c0_16] : memref<1x16xf32, #tpu.memory_space<vmem>>, vector<1x16xf32>
    %21 = vector.broadcast %20 : vector<1x16xf32> to vector<104x16xf32>
    %22 = arith.addf %19, %21 : vector<104x16xf32>
    %c0_17 = arith.constant 0 : index
    %c0_18 = arith.constant 0 : index
    %23 = vector.load %arg8[%c0_17, %c0_18] : memref<104x16xf32, #tpu.memory_space<vmem>>, vector<104x16xf32>
    tpu.vector_store %arg8[%c0_17, %c0_18], %22 {strides = array<i32>} : memref<104x16xf32, #tpu.memory_space<vmem>>, vector<104x16xf32>,
    return
  }
  func.func @transform_0(%arg0: i32) -> (i32, i32) {
    %c0_i32 = arith.constant 0 : i32
    %c0_i32_0 = arith.constant 0 : i32
    return %arg0, %c0_i32 : i32, i32
  }
  func.func @transform_1(%arg0: i32) -> (i32, i32) {
    %c0_i32 = arith.constant 0 : i32
    %c0_i32_0 = arith.constant 0 : i32
    %c0_i32_1 = arith.constant 0 : i32
    return %c0_i32, %c0_i32_0 : i32, i32
  }
  func.func @transform_2(%arg0: i32) -> (i32, i32) {
    %c0_i32 = arith.constant 0 : i32
    %c0_i32_0 = arith.constant 0 : i32
    %c0_i32_1 = arith.constant 0 : i32
    return %c0_i32, %c0_i32_0 : i32, i32
  }
  func.func @transform_3(%arg0: i32) -> (i32, i32) {
    %c0_i32 = arith.constant 0 : i32
    %c0_i32_0 = arith.constant 0 : i32
    %c0_i32_1 = arith.constant 0 : i32
    return %c0_i32, %c0_i32_0 : i32, i32
  }
  func.func @transform_4(%arg0: i32) -> (i32, i32) {
    %c0_i32 = arith.constant 0 : i32
    %c0_i32_0 = arith.constant 0 : i32
    %c0_i32_1 = arith.constant 0 : i32
    return %c0_i32, %c0_i32_0 : i32, i32
  }
  func.func @transform_5(%arg0: i32) -> (i32, i32) {
    %c0_i32 = arith.constant 0 : i32
    %c0_i32_0 = arith.constant 0 : i32
    %c0_i32_1 = arith.constant 0 : i32
    return %c0_i32, %c0_i32_0 : i32, i32
  }
  func.func @transform_6(%arg0: i32) -> (i32, i32) {
    %c0_i32 = arith.constant 0 : i32
    %c0_i32_0 = arith.constant 0 : i32
    %c0_i32_1 = arith.constant 0 : i32
    return %c0_i32, %c0_i32_0 : i32, i32
  }
  func.func @transform_7(%arg0: i32) -> (i32, i32) {
    %c0_i32 = arith.constant 0 : i32
    %c0_i32_0 = arith.constant 0 : i32
    return %arg0, %c0_i32 : i32, i32
  }
}

</mosaic_0001>

<bundles_post_ra>
// kernel: net_forward.1
= control target key start
LH: loop header
LB: loop body
LE: loop exit
PB: predicated region body
PF: predicated region fallthrough
CT: control target
= control target key end

     0   :  { %s1069_s24 = smov 0   ;;  %s1272_s0 = inlined_call_operand.vmem [shape: f32[208,64], index: 0, kind: input, shape index: {}]   ;;  %s1273_s1 = inlined_call_operand.vmem [shape: bf16[64,32], index: 1, kind: input, shape index: {}]   ;;  %s1274_s2 = inlined_call_operand.vmem [shape: f32[1,32], index: 2, kind: input, shape index: {}]   ;;  %s1275_s3 = inlined_call_operand.vmem [shape: bf16[32,32], index: 3, kind: input, shape index: {}]   ;;  %s1276_s4 = inlined_call_operand.vmem [shape: f32[1,32], index: 4, kind: input, shape index: {}]   ;;  %s1277_s5 = inlined_call_operand.vmem [shape: bf16[32,16], index: 5, kind: input, shape index: {}]   ;;  %s1278_s6 = inlined_call_operand.vmem [shape: f32[1,16], index: 6, kind: input, shape index: {}]   ;;  %s1279_s7 = inlined_call_operand.vmem [shape: f32[208,16], index: 7, kind: output, shape index: {}]  }
   0x1 LB: > { %s827_s25 = sadd.s32 4294967295, %s1025_s24   ;;  %p831_p0 = scmp.ge.s32.totalorder %s1025_s24, 1  ;;  %s1025_s24 = sphi %s1069_s24, %s17_s24  }
   0x2   : > { %p238_p1 = scmp.lt.s32.totalorder %s1025_s24, 3 }
   0x4   : > { %p239_p2 = pnand %p831_p0, %p238_p1 }
   0x5   : > { %v1011_v0 = vld [vmem:[%s1273_s1] sm:$0xff] (!%p239_p2)   ;;  %v1027_v1 = vmov (!%p239_p2), 0.0   ;;  %v1012_v2 = vld [vmem:[%s1273_s1 + $0x8] sm:$0xff] (!%p239_p2)   ;;  %vm1028_vm0 = vmmov (!%p239_p2), 0   ;;  %s270_s30 = smul.u32 (!%p239_p2), 13, %s827_s25  ;;  %v1013_v4 = vld [vmem:[%s1273_s1 + $0x10] sm:$0xff] (!%p239_p2)  }
   0x6   : > { %242 = sbr.rel (%p239_p2) target bundleno = 725 (0x2d5), region = 48  ;;  %897 = vmatprep.subr.bf16.mxu0 (!%p239_p2), %v1027_v1  ;;  %997 = vmatprep.subr.bf16.mxu1 (!%p239_p2), %v1027_v1  ;;  %v1015_v3 = vld [vmem:[%s1275_s3] sm:$0xff] (!%p239_p2)   ;;  %v1016_v5 = vld [vmem:[%s1275_s3 + $0x8] sm:$0xff] (!%p239_p2)   ;;  %v1014_v6 = vld [vmem:[%s1273_s1 + $0x18] sm:$0xff] (!%p239_p2)   ;;  %vm342_vm1 = vcmask (!%p239_p2), 523264   ;;  %vm495_vm2 = vcmask (!%p239_p2), 261120  }
   0x7   : > { %898 = vmatpush3.bf16.msra.mxu0 (!%p239_p2), %v1011_v0  ;;  %905 = vmatprep.mubr.msk.bf16.mxu0 (!%p239_p2), %vm1028_vm0, %v1027_v1  ;;  %p271_p3 = scmp.lt.s32.totalorder (!%p239_p2), %s270_s30, 25  ;;  %v1155_v27 = vld [vmem:[%s1274_s2] ss:$0 sm:$0xff] (!%p239_p2)  ;;  %vm757_vm3 = vcmask (!%p239_p2), 130048  }
   0x8   : > { %899 = vmatprep.subr.bf16.mxu0 (!%p239_p2), %v1027_v1  ;;  %949 = vmatprep.mubr.msk.bf16.mxu1 (!%p239_p2), %vm1028_vm0, %v1027_v1  ;;  %v1017_v63 = vld [vmem:[%s1277_s5] sm:$0xff] (!%p239_p2)  }
   0x9   : > { %999 = vmatpush3.bf16.msra.mxu1 (!%p239_p2), %v1015_v3 }
   0xa   : > { %998 = vmatprep.subr.bf16.mxu1 (!%p239_p2), %v1027_v1 }
   0xb   : > { %900 = vmatpush3.bf16.msra.mxu0 (!%p239_p2), %v1012_v2 }
   0xc   : > { %901 = vmatprep.subr.bf16.mxu0 (!%p239_p2), %v1027_v1 }
   0xd   : > { %s1281_s30 = smov (!%p271_p3, %s270_s30), 25  ;;  %1000 = vmatpush3.bf16.msra.mxu1 %v1016_v5 }
   0xe   : > { %s832_s12 = sshll.u32 %s1281_s30, 3  ;;  %965 = vmatprep.subr.bf16.mxu1 %v1027_v1 }
   0xf   : > { %s1109_s17 = scalar_lea.vmem %s1272_s0, %s832_s12  ;;  %902 = vmatpush3.bf16.msra.mxu0 %v1013_v4  ;;  %s1241_s11 = scalar_lea.vmem %s1279_s7, %s832_s12 }
  0x10   : > { %v283_v7 = vld [vmem:[%s1109_s17] sm:$0xff]  ;;  %v284_v8 = vld [vmem:[%s1109_s17 + $0x8] sm:$0xff]  ;;  %903 = vmatprep.subr.bf16.mxu0 %v1027_v1  ;;  %v285_v10 = vld [vmem:[%s1109_s17 + $0x10] sm:$0xff] }
  0x11   : > { %v296_v9 = vpack.c.bf16 %v284_v8, %v283_v7  ;;  %v286_v11 = vld [vmem:[%s1109_s17 + $0x18] sm:$0xff]  ;;  %v287_v13 = vld [vmem:[%s1109_s17 + $0x20] sm:$0xff]  ;;  %v288_v14 = vld [vmem:[%s1109_s17 + $0x28] sm:$0xff] }
  0x12   : > { %v297_v12 = vpack.c.bf16 %v286_v11, %v285_v10  ;;  %v298_v15 = vpack.c.bf16 %v288_v14, %v287_v13  ;;  %v289_v16 = vld [vmem:[%s1109_s17 + $0x30] sm:$0xff]  ;;  %v290_v17 = vld [vmem:[%s1109_s17 + $0x38] sm:$0xff]  ;;  %v291_v19 = vld [vmem:[%s1109_s17 + $0x40] sm:$0xff] }
  0x13   : > { %904 = vmatpush3.bf16.msra.mxu0 %v1014_v6  ;;  %v299_v18 = vpack.c.bf16 %v290_v17, %v289_v16  ;;  %v292_v20 = vld [vmem:[%s1109_s17 + $0x48] sm:$0xff]  ;;  %v293_v22 = vld [vmem:[%s1109_s17 + $0x50] sm:$0xff]  ;;  %v294_v23 = vld [vmem:[%s1109_s17 + $0x58] sm:$0xff] }
  0x14   : > { %933 = vmatprep.subr.bf16.mxu0 %v1027_v1  ;;  %v300_v21 = vpack.c.bf16 %v292_v20, %v291_v19  ;;  %v301_v24 = vpack.c.bf16 %v294_v23, %v293_v22  ;;  %v295_v25 = vld [vmem:[%s1109_s17 + $0x60] sm:$0xff]  ;;  %v1018_v6 = vld [vmem:[%s1277_s5 + $0x8] sm:$0xff]  }
  0x15   : > { %v302_v26 = vpack.c.bf16 %v295_v25, %v295_v25 }
  0x16   : > { %906 = vmatmul.mubr.msk.bf16.vlgmr.msra.gmra.mrb[0].mxu0 %vm342_vm1, %v296_v9 }
  0x17   : > { %909 = vmatprep.mubr.msk.bf16.mxu0 %vm1028_vm0, %v1027_v1  ;;  %934 = vmatpush3.bf16.msra.mxu0 %v1015_v3 }
  0x18   : > { %935 = vmatprep.subr.bf16.mxu0 %v1027_v1 }
  0x1b   : > { %936 = vmatpush3.bf16.msra.mxu0 %v1016_v5 }
  0x1e   : > { %910 = vmatmul.mubr.msk.bf16.gmra.mrb[4].mxu0 %vm342_vm1, %v297_v12 }
  0x1f   : > { %913 = vmatprep.mubr.msk.bf16.mxu0 %vm1028_vm0, %v1027_v1 }
  0x26   : > { %914 = vmatmul.mubr.msk.bf16.gmra.mrb[8].mxu0 %vm342_vm1, %v298_v15 }
  0x27   : > { %917 = vmatprep.mubr.msk.bf16.mxu0 %vm1028_vm0, %v1027_v1 }
  0x2e   : > { %918 = vmatmul.mubr.msk.bf16.gmra.mrb[12].mxu0 %vm342_vm1, %v299_v18 }
  0x2f   : > { %921 = vmatprep.mubr.msk.bf16.mxu0 %vm1028_vm0, %v1027_v1 }
  0x36   : > { %922 = vmatmul.mubr.msk.bf16.gmra.mrb[16].mxu0 %vm342_vm1, %v300_v21 }
  0x37   : > { %925 = vmatprep.mubr.msk.bf16.mxu0 %vm1028_vm0, %v1027_v1 }
  0x3e   : > { %926 = vmatmul.mubr.msk.bf16.gmra.mrb[20].mxu0 %vm342_vm1, %v301_v24 }
  0x3f   : > { %929 = vmatprep.mubr.msk.bf16.mxu0 %vm1028_vm0, %v1027_v1 }
  0x46   : > { %930 = vmatmul.mubr.msk.bf16.gmra.mrb[24].mxu0 %vm342_vm1, %v302_v26 }
  0x47   : > { %937 = vmatprep.mubr.msk.bf16.mxu0 %vm1028_vm0, %v1027_v1 }
  0xe9   : > { %v398_v28 = vpop.f32.mrb[0].mxu0 }
  0xea   : > { %v399_v29 = vadd.f32 %v1155_v27, %v398_v28  ;;  %v907_v30 = vpop.f32.mrb[1].mxu0 }
  0xeb   : > { %v401_v31 = vpop.f32.mrb[2].mxu0 }
  0xec   : > { %v402_v32 = vadd.f32 %v1155_v27, %v401_v31  ;;  %v908_v33 = vpop.f32.mrb[3].mxu0  ;;  %v452_v34 = vmax.f32 %v399_v29, 0.0  ;;  %v1199_v29 = vld [vmem:[%s1276_s4] ss:$0 sm:$0xff] }
  0xee   : > { %v453_v35 = vmax.f32 %v402_v32, 0.0 }
  0xf0   : > { %v465_v36 = vpack.c.bf16 %v453_v35, %v452_v34 }
  0xf1   : > { %v406_v37 = vpop.f32.mrb[4].mxu0 }
  0xf2   : > { %v407_v38 = vadd.f32 %v1155_v27, %v406_v37  ;;  %v911_v39 = vpop.f32.mrb[5].mxu0  ;;  %938 = vmatmul.mubr.msk.bf16.vlgmr.msra.gmra.mrb[28].mxu0 %vm495_vm2, %v465_v36 }
  0xf3   : > { %v409_v40 = vpop.f32.mrb[6].mxu0  ;;  %941 = vmatprep.mubr.msk.bf16.mxu0 %vm1028_vm0, %v1027_v1 }
  0xf4   : > { %v410_v41 = vadd.f32 %v1155_v27, %v409_v40  ;;  %v912_v42 = vpop.f32.mrb[7].mxu0  ;;  %v454_v43 = vmax.f32 %v407_v38, 0.0 }
  0xf6   : > { %v455_v44 = vmax.f32 %v410_v41, 0.0 }
  0xf8   : > { %v466_v45 = vpack.c.bf16 %v455_v44, %v454_v43 }
  0xf9   : > { %v414_v46 = vpop.f32.mrb[8].mxu0 }
  0xfa   : > { %v415_v47 = vadd.f32 %v1155_v27, %v414_v46  ;;  %v915_v48 = vpop.f32.mrb[9].mxu0  ;;  %942 = vmatmul.mubr.msk.bf16.gmra.mrb[32].mxu0 %vm495_vm2, %v466_v45 }
  0xfb   : > { %v417_v49 = vpop.f32.mrb[10].mxu0  ;;  %945 = vmatprep.mubr.msk.bf16.mxu0 %vm1028_vm0, %v1027_v1 }
  0xfc   : > { %v418_v50 = vadd.f32 %v1155_v27, %v417_v49  ;;  %v916_v51 = vpop.f32.mrb[11].mxu0  ;;  %v456_v52 = vmax.f32 %v415_v47, 0.0 }
  0xfe   : > { %v457_v53 = vmax.f32 %v418_v50, 0.0 }
 0x100   : > { %v467_v54 = vpack.c.bf16 %v457_v53, %v456_v52 }
 0x101   : > { %v422_v55 = vpop.f32.mrb[12].mxu0 }
 0x102   : > { %v423_v56 = vadd.f32 %v1155_v27, %v422_v55  ;;  %v919_v57 = vpop.f32.mrb[13].mxu0  ;;  %946 = vmatmul.mubr.msk.bf16.gmra.mrb[36].mxu0 %vm495_vm2, %v467_v54 }
 0x103   : > { %v425_v58 = vpop.f32.mrb[14].mxu0 }
 0x104   : > { %v426_v59 = vadd.f32 %v1155_v27, %v425_v58  ;;  %v920_v60 = vpop.f32.mrb[15].mxu0  ;;  %v458_v61 = vmax.f32 %v423_v56, 0.0 }
 0x106   : > { %v459_v62 = vmax.f32 %v426_v59, 0.0 }
 0x108   : > { %v468_v0 = vpack.c.bf16 %v459_v62, %v458_v61 }
 0x109   : > { %v430_v2 = vpop.f32.mrb[16].mxu0 }
 0x10a   : > { %v431_v3 = vadd.f32 %v1155_v27, %v430_v2  ;;  %v923_v4 = vpop.f32.mrb[17].mxu0  ;;  %950 = vmatmul.mubr.msk.bf16.vlgmr.msra.gmra.mrb[0].mxu1 %vm495_vm2, %v468_v0 }
 0x10b   : > { %v433_v5 = vpop.f32.mrb[18].mxu0  ;;  %953 = vmatprep.mubr.msk.bf16.mxu1 %vm1028_vm0, %v1027_v1  ;;  %966 = vmatpush3.bf16.msra.mxu1 %v1017_v63 }
 0x10c   : > { %v434_v7 = vadd.f32 %v1155_v27, %v433_v5  ;;  %v924_v8 = vpop.f32.mrb[19].mxu0  ;;  %967 = vmatprep.subr.bf16.mxu1 %v1027_v1  ;;  %v460_v9 = vmax.f32 %v431_v3, 0.0 }
 0x10e   : > { %v461_v10 = vmax.f32 %v434_v7, 0.0 }
 0x10f   : > { %968 = vmatpush3.bf16.msra.mxu1 %v1018_v6 }
 0x110   : > { %v469_v11 = vpack.c.bf16 %v461_v10, %v460_v9 }
 0x111   : > { %v438_v12 = vpop.f32.mrb[20].mxu0 }
 0x112   : > { %v439_v13 = vadd.f32 %v1155_v27, %v438_v12  ;;  %v927_v14 = vpop.f32.mrb[21].mxu0  ;;  %954 = vmatmul.mubr.msk.bf16.gmra.mrb[4].mxu1 %vm495_vm2, %v469_v11 }
 0x113   : > { %v441_v15 = vpop.f32.mrb[22].mxu0  ;;  %957 = vmatprep.mubr.msk.bf16.mxu1 %vm1028_vm0, %v1027_v1 }
 0x114   : > { %v442_v16 = vadd.f32 %v1155_v27, %v441_v15  ;;  %v928_v17 = vpop.f32.mrb[23].mxu0  ;;  %v462_v18 = vmax.f32 %v439_v13, 0.0 }
 0x116   : > { %v463_v19 = vmax.f32 %v442_v16, 0.0 }
 0x118   : > { %v470_v20 = vpack.c.bf16 %v463_v19, %v462_v18 }
 0x119   : > { %v446_v21 = vpop.f32.mrb[24].mxu0 }
 0x11a   : > { %v447_v22 = vadd.f32 %v1155_v27, %v446_v21  ;;  %958 = vmatmul.mubr.msk.bf16.gmra.mrb[8].mxu1 %vm495_vm2, %v470_v20  ;;  %v931_v23 = vpop.f32.mrb[25].mxu0 }
 0x11b   : > { %v449_v24 = vpop.f32.mrb[26].mxu0  ;;  %961 = vmatprep.mubr.msk.bf16.mxu1 %vm1028_vm0, %v1027_v1 }
 0x11c   : > { %v464_v25 = vmax.f32 %v447_v22, 0.0  ;;  %v932_v26 = vpop.f32.mrb[27].mxu0 }
 0x11e   : > { %v471_v28 = vpack.c.bf16 %v464_v25, %v464_v25 }
 0x122   : > { %962 = vmatmul.mubr.msk.bf16.gmra.mrb[12].mxu1 %vm495_vm2, %v471_v28  ;;  %v856_v28 = vld [vmem:[%s1278_s6] ss:$0 sm:$0xff] }
 0x123   : > { %969 = vmatprep.mubr.msk.bf16.mxu1 %vm1028_vm0, %v1027_v1 }
 0x1c5   : > { %v551_v27 = vpop.f32.mrb[28].mxu0 }
 0x1c6   : > { %v552_v30 = vadd.f32 %v1199_v29, %v551_v27  ;;  %v939_v31 = vpop.f32.mrb[29].mxu0 }
 0x1c7   : > { %v554_v32 = vpop.f32.mrb[30].mxu0 }
 0x1c8   : > { %v555_v33 = vadd.f32 %v1199_v29, %v554_v32  ;;  %v940_v34 = vpop.f32.mrb[31].mxu0  ;;  %v605_v35 = vmax.f32 %v552_v30, 0.0 }
 0x1ca   : > { %v606_v36 = vmax.f32 %v555_v33, 0.0 }
 0x1cc   : > { %v618_v37 = vpack.c.bf16 %v606_v36, %v605_v35 }
 0x1cd   : > { %v559_v38 = vpop.f32.mrb[32].mxu0 }
 0x1ce   : > { %v560_v39 = vadd.f32 %v1199_v29, %v559_v38  ;;  %v943_v40 = vpop.f32.mrb[33].mxu0  ;;  %970 = vmatmul.mubr.msk.bf16.vlgmr.msra.gmra.mrb[16].mxu1 %vm495_vm2, %v618_v37 }
 0x1cf   : > { %v562_v41 = vpop.f32.mrb[34].mxu0  ;;  %973 = vmatprep.mubr.msk.bf16.mxu1 %vm1028_vm0, %v1027_v1 }
 0x1d0   : > { %v563_v42 = vadd.f32 %v1199_v29, %v562_v41  ;;  %v944_v43 = vpop.f32.mrb[35].mxu0  ;;  %v607_v44 = vmax.f32 %v560_v39, 0.0 }
 0x1d2   : > { %v608_v45 = vmax.f32 %v563_v42, 0.0 }
 0x1d4   : > { %v619_v46 = vpack.c.bf16 %v608_v45, %v607_v44 }
 0x1d5   : > { %v567_v47 = vpop.f32.mrb[36].mxu0 }
 0x1d6   : > { %v568_v48 = vadd.f32 %v1199_v29, %v567_v47  ;;  %v947_v49 = vpop.f32.mrb[37].mxu0  ;;  %974 = vmatmul.mubr.msk.bf16.gmra.mrb[20].mxu1 %vm495_vm2, %v619_v46 }
 0x1d7   : > { %v570_v50 = vpop.f32.mrb[38].mxu0  ;;  %977 = vmatprep.mubr.msk.bf16.mxu1 %vm1028_vm0, %v1027_v1 }
 0x1d8   : > { %v571_v51 = vadd.f32 %v1199_v29, %v570_v50  ;;  %v948_v52 = vpop.f32.mrb[39].mxu0  ;;  %v609_v53 = vmax.f32 %v568_v48, 0.0 }
 0x1da   : > { %v610_v54 = vmax.f32 %v571_v51, 0.0 }
 0x1dc   : > { %v620_v55 = vpack.c.bf16 %v610_v54, %v609_v53 }
 0x1dd   : > { %v575_v56 = vpop.f32.mrb[0].mxu1 }
 0x1de   : > { %v576_v57 = vadd.f32 %v1199_v29, %v575_v56  ;;  %v951_v58 = vpop.f32.mrb[1].mxu1  ;;  %978 = vmatmul.mubr.msk.bf16.gmra.mrb[24].mxu1 %vm495_vm2, %v620_v55 }
 0x1df   : > { %v578_v59 = vpop.f32.mrb[2].mxu1  ;;  %981 = vmatprep.mubr.msk.bf16.mxu1 %vm1028_vm0, %v1027_v1 }
 0x1e0   : > { %v579_v60 = vadd.f32 %v1199_v29, %v578_v59  ;;  %v952_v61 = vpop.f32.mrb[3].mxu1  ;;  %v611_v62 = vmax.f32 %v576_v57, 0.0 }
 0x1e2   : > { %v612_v63 = vmax.f32 %v579_v60, 0.0 }
 0x1e4   : > { %v621_v0 = vpack.c.bf16 %v612_v63, %v611_v62 }
 0x1e5   : > { %v583_v2 = vpop.f32.mrb[4].mxu1 }
 0x1e6   : > { %v584_v3 = vadd.f32 %v1199_v29, %v583_v2  ;;  %v955_v4 = vpop.f32.mrb[5].mxu1  ;;  %982 = vmatmul.mubr.msk.bf16.gmra.mrb[28].mxu1 %vm495_vm2, %v621_v0 }
 0x1e7   : > { %v586_v5 = vpop.f32.mrb[6].mxu1  ;;  %985 = vmatprep.mubr.msk.bf16.mxu1 %vm1028_vm0, %v1027_v1 }
 0x1e8   : > { %v587_v6 = vadd.f32 %v1199_v29, %v586_v5  ;;  %v956_v7 = vpop.f32.mrb[7].mxu1  ;;  %v613_v8 = vmax.f32 %v584_v3, 0.0 }
 0x1ea   : > { %v614_v9 = vmax.f32 %v587_v6, 0.0 }
 0x1ec   : > { %v622_v10 = vpack.c.bf16 %v614_v9, %v613_v8 }
 0x1ed   : > { %v591_v11 = vpop.f32.mrb[8].mxu1 }
 0x1ee   : > { %v592_v12 = vadd.f32 %v1199_v29, %v591_v11  ;;  %v959_v13 = vpop.f32.mrb[9].mxu1  ;;  %986 = vmatmul.mubr.msk.bf16.gmra.mrb[32].mxu1 %vm495_vm2, %v622_v10 }
 0x1ef   : > { %v594_v14 = vpop.f32.mrb[10].mxu1  ;;  %989 = vmatprep.mubr.msk.bf16.mxu1 %vm1028_vm0, %v1027_v1 }
 0x1f0   : > { %v595_v15 = vadd.f32 %v1199_v29, %v594_v14  ;;  %v960_v16 = vpop.f32.mrb[11].mxu1  ;;  %v615_v17 = vmax.f32 %v592_v12, 0.0 }
 0x1f2   : > { %v616_v18 = vmax.f32 %v595_v15, 0.0 }
 0x1f4   : > { %v623_v19 = vpack.c.bf16 %v616_v18, %v615_v17 }
 0x1f5   : > { %v599_v20 = vpop.f32.mrb[12].mxu1 }
 0x1f6   : > { %v600_v21 = vadd.f32 %v1199_v29, %v599_v20  ;;  %v963_v22 = vpop.f32.mrb[13].mxu1  ;;  %990 = vmatmul.mubr.msk.bf16.gmra.mrb[36].mxu1 %vm495_vm2, %v623_v19 }
 0x1f7   : > { %v602_v23 = vpop.f32.mrb[14].mxu1  ;;  %993 = vmatprep.mubr.msk.bf16.mxu1 %vm1028_vm0, %v1027_v1 }
 0x1f8   : > { %v617_v24 = vmax.f32 %v600_v21, 0.0  ;;  %v964_v25 = vpop.f32.mrb[15].mxu1 }
 0x1fa   : > { %v624_v26 = vpack.c.bf16 %v617_v24, %v617_v24 }
 0x1fe   : > { %994 = vmatmul.mubr.msk.bf16.gmra.mrb[40].mxu1 %vm495_vm2, %v624_v26 }
 0x2a1   : > { %v703_v29 = vpop.f32.mrb[16].mxu1 }
 0x2a2   : > { %v704_v1 = vadd.f32 %v856_v28, %v703_v29  ;;  %v971_v27 = vpop.f32.mrb[17].mxu1 }
 0x2a3   : > { %v706_v30 = vpop.f32.mrb[18].mxu1 }
 0x2a4   : > { %758 = vst.msk [vmem:[%s1241_s11] sm:$0xff] %vm757_vm3, %v704_v1  ;;  %v707_v31 = vadd.f32 %v856_v28, %v706_v30  ;;  %v972_v32 = vpop.f32.mrb[19].mxu1 }
 0x2a6   : > { %759 = vst.msk [vmem:[%s1241_s11 + $0x8] sm:$0xff] %vm757_vm3, %v707_v31 }
 0x2a9   : > { %v711_v33 = vpop.f32.mrb[20].mxu1 }
 0x2aa   : > { %v712_v34 = vadd.f32 %v856_v28, %v711_v33  ;;  %v975_v35 = vpop.f32.mrb[21].mxu1 }
 0x2ab   : > { %v714_v36 = vpop.f32.mrb[22].mxu1 }
 0x2ac   : > { %760 = vst.msk [vmem:[%s1241_s11 + $0x10] sm:$0xff] %vm757_vm3, %v712_v34  ;;  %v715_v37 = vadd.f32 %v856_v28, %v714_v36  ;;  %v976_v38 = vpop.f32.mrb[23].mxu1 }
 0x2ae   : > { %761 = vst.msk [vmem:[%s1241_s11 + $0x18] sm:$0xff] %vm757_vm3, %v715_v37 }
 0x2b1   : > { %v719_v39 = vpop.f32.mrb[24].mxu1 }
 0x2b2   : > { %v720_v40 = vadd.f32 %v856_v28, %v719_v39  ;;  %v979_v41 = vpop.f32.mrb[25].mxu1 }
 0x2b3   : > { %v722_v42 = vpop.f32.mrb[26].mxu1 }
 0x2b4   : > { %762 = vst.msk [vmem:[%s1241_s11 + $0x20] sm:$0xff] %vm757_vm3, %v720_v40  ;;  %v723_v43 = vadd.f32 %v856_v28, %v722_v42  ;;  %v980_v44 = vpop.f32.mrb[27].mxu1 }
 0x2b6   : > { %763 = vst.msk [vmem:[%s1241_s11 + $0x28] sm:$0xff] %vm757_vm3, %v723_v43 }
 0x2b9   : > { %v727_v45 = vpop.f32.mrb[28].mxu1 }
 0x2ba   : > { %v728_v46 = vadd.f32 %v856_v28, %v727_v45  ;;  %v983_v47 = vpop.f32.mrb[29].mxu1 }
 0x2bb   : > { %v730_v48 = vpop.f32.mrb[30].mxu1 }
 0x2bc   : > { %764 = vst.msk [vmem:[%s1241_s11 + $0x30] sm:$0xff] %vm757_vm3, %v728_v46  ;;  %v731_v49 = vadd.f32 %v856_v28, %v730_v48  ;;  %v984_v50 = vpop.f32.mrb[31].mxu1 }
 0x2be   : > { %765 = vst.msk [vmem:[%s1241_s11 + $0x38] sm:$0xff] %vm757_vm3, %v731_v49 }
 0x2c1   : > { %v735_v51 = vpop.f32.mrb[32].mxu1 }
 0x2c2   : > { %v736_v52 = vadd.f32 %v856_v28, %v735_v51  ;;  %v987_v53 = vpop.f32.mrb[33].mxu1 }
 0x2c3   : > { %v738_v54 = vpop.f32.mrb[34].mxu1 }
 0x2c4   : > { %766 = vst.msk [vmem:[%s1241_s11 + $0x40] sm:$0xff] %vm757_vm3, %v736_v52  ;;  %v739_v55 = vadd.f32 %v856_v28, %v738_v54  ;;  %v988_v56 = vpop.f32.mrb[35].mxu1 }
 0x2c6   : > { %767 = vst.msk [vmem:[%s1241_s11 + $0x48] sm:$0xff] %vm757_vm3, %v739_v55 }
 0x2c9   : > { %v743_v57 = vpop.f32.mrb[36].mxu1 }
 0x2ca   : > { %v744_v58 = vadd.f32 %v856_v28, %v743_v57  ;;  %v991_v59 = vpop.f32.mrb[37].mxu1 }
 0x2cb   : > { %v746_v60 = vpop.f32.mrb[38].mxu1 }
 0x2cc   : > { %768 = vst.msk [vmem:[%s1241_s11 + $0x50] sm:$0xff] %vm757_vm3, %v744_v58  ;;  %v747_v61 = vadd.f32 %v856_v28, %v746_v60  ;;  %v992_v62 = vpop.f32.mrb[39].mxu1 }
 0x2ce   : > { %769 = vst.msk [vmem:[%s1241_s11 + $0x58] sm:$0xff] %vm757_vm3, %v747_v61 }
 0x2d1   : > { %v751_v63 = vpop.f32.mrb[40].mxu1 }
 0x2d2   : > { %v752_v0 = vadd.f32 %v856_v28, %v751_v63  ;;  %v995_v2 = vpop.f32.mrb[41].mxu1 }
 0x2d3   : > { %v754_v3 = vpop.f32.mrb[42].mxu1 }
 0x2d4   : > { %770 = vst.msk [vmem:[%s1241_s11 + $0x60] sm:$0xff] %vm757_vm3, %v752_v0  ;;  %v996_v4 = vpop.f32.mrb[43].mxu1 }
 0x2d5 PF: > { %s17_s24 = sadd.s32 1, %s1025_s24  }
 0x2d6   : > { %p14_p4 = scmp.ge.s32.totalorder %s17_s24, 4  }
 0x2d8   :  { %16 = sbr.rel (!%p14_p4) target bundleno = 1 (0x1), region = 78 }

</bundles_post_ra>
